<compile_context>
chip_gen: v5e
topology: v5e:2x2
jax: 0.10.0
libtpu: 0.0.40
codegen_flags: <defaults>
</compile_context>

<pallas_src>
import functools
import math

import jax
import jax.numpy as jnp
from jax.experimental import pallas as pl
from jax.experimental.pallas import tpu as pltpu


def _round_up(x, m):
    return (x + m - 1) // m * m


# ---------------------------------------------------------------------------
# Chip-aware tiling configuration.
# ---------------------------------------------------------------------------
_CHIP_CFG = {
    # budget  : max double-buffered VMEM tile footprint we allow ourselves.
    # vmem    : scoped-VMEM limit to request (None -> keep compiler default).
    # num_tc  : TensorCores per device (v7x = 2 -> keep a parallel axis >= 2).
    "v5e": dict(budget=40 << 20, vmem=64 << 20, num_tc=1,
                tm_cands=(256, 128),
                tn_cands=(512, 384, 256, 128),          # 128x128 MXU: 384 packs fine
                tk_cands=(1024, 512, 384, 256, 128)),
    "v6e": dict(budget=56 << 20, vmem=80 << 20, num_tc=1,
                tm_cands=(512, 256, 128),
                tn_cands=(1024, 512, 256, 128),         # 256x256 MXU: multiples of 256
                tk_cands=(2048, 1024, 512, 256, 128)),
    "v7x": dict(budget=24 << 20, vmem=None, num_tc=2,   # stay under 32 MiB scoped default
                tm_cands=(512, 256, 128),
                tn_cands=(1024, 512, 256, 128),
                tk_cands=(2048, 1024, 512, 256, 128)),
    "unknown": dict(budget=24 << 20, vmem=None, num_tc=1,
                    tm_cands=(256, 128),
                    tn_cands=(512, 256, 128),
                    tk_cands=(1024, 512, 256, 128)),
}


@functools.lru_cache(maxsize=1)
def _chip():
    try:
        kind = jax.devices()[0].device_kind.lower()
    except Exception:
        return "unknown"
    if "v5" in kind and ("lite" in kind or "5e" in kind):
        return "v5e"
    if "v6" in kind or "6e" in kind:
        return "v6e"
    if "7x" in kind or "v7" in kind:
        return "v7x"
    return "unknown"


def _cfg():
    return _CHIP_CFG[_chip()]


def _largest_divisor(pad, cands):
    for c in cands:
        if pad % c == 0:
            return c
    return 128  # pad is always a multiple of 128


def _shrink(cur, pad, cands):
    for c in cands:
        if c < cur and pad % c == 0:
            return c
    return cur


def _footprint_bytes(tm, tn, tk, in_itemsize, out_itemsize):
    # Double-buffered x / w / bias / out tiles + one f32 accumulator.
    return (2 * tm * tk * in_itemsize + 2 * tk * tn * in_itemsize
            + 2 * tn * 4 + 2 * tm * tn * out_itemsize + tm * tn * 4)


def _pick_tiles(M, k_pad, n_pad, in_itemsize, out_itemsize):
    cfg = _cfg()

    if M <= 256:
        # Small-batch regime: whole (padded) batch is a single M tile, so the
        # [K, N] weight streams from HBM exactly once.
        m_pad = _round_up(M, 16)
        tm = m_pad
        tm_cands = (tm,)
    else:
        m_pad = _round_up(M, 128)
        tm = _largest_divisor(m_pad, cfg["tm_cands"])
        tm_cands = cfg["tm_cands"]

    tk = _largest_divisor(k_pad, cfg["tk_cands"])
    tn = _largest_divisor(n_pad, cfg["tn_cands"])

    # v7x (2 TensorCores): make sure at least one "parallel" axis has extent >= 2.
    if (cfg["num_tc"] >= 2 and m_pad // tm == 1 and n_pad // tn == 1
            and n_pad % 256 == 0):
        tn = n_pad // 2

    budget = cfg["budget"]
    while _footprint_bytes(tm, tn, tk, in_itemsize, out_itemsize) > budget:
        new_tk = _shrink(tk, k_pad, cfg["tk_cands"])
        new_tn = _shrink(tn, n_pad, cfg["tn_cands"])
        new_tm = _shrink(tm, m_pad, tm_cands)
        if tk >= tn and new_tk < tk:
            tk = new_tk
        elif new_tn < tn:
            tn = new_tn
        elif new_tk < tk:
            tk = new_tk
        elif new_tm < tm:
            tm = new_tm
        else:
            break
    return tm, tn, tk, m_pad


# ---------------------------------------------------------------------------
# Kernels.
# ---------------------------------------------------------------------------
def _mm_bias_kernel_single_k(x_ref, w_ref, b_ref, o_ref):
    # grid = (M//tm, N//tn): the whole (padded) reduction fits one tile, so no
    # f32 scratch accumulator and no pl.when phases are needed.
    acc = jnp.dot(x_ref[...], w_ref[...], preferred_element_type=jnp.float32)
    o_ref[...] = (acc + b_ref[...]).astype(o_ref.dtype)


def _mm_bias_kernel(x_ref, w_ref, b_ref, o_ref, acc_ref):
    # grid = (M//tm, N//tn, K//tk); K is the innermost ("arbitrary") reduction axis.
    @pl.when(pl.program_id(2) == 0)
    def _():
        acc_ref[...] = jnp.zeros_like(acc_ref)

    acc_ref[...] += jnp.dot(
        x_ref[...], w_ref[...], preferred_element_type=jnp.float32
    )

    @pl.when(pl.program_id(2) == pl.num_programs(2) - 1)
    def _():
        # Bias block index is constant along k -> DMA'd once per (i, j) tile.
        o_ref[...] = (acc_ref[...] + b_ref[...]).astype(o_ref.dtype)


# ---------------------------------------------------------------------------
# Wrappers.
# ---------------------------------------------------------------------------
def prepare_params(weight, bias, *, compute_dtype=jnp.bfloat16):
    """One-time parameter conversion (hoist out of the per-call hot path).

    Casts the weight to `compute_dtype` BEFORE padding, pads K/N to multiples
    of 128 and keeps the bias in f32 (it is added to the f32 accumulator inside
    the kernel).  Returns (weight_padded, bias_padded[1, n_pad], out_dim).
    """
    K, N = weight.shape
    assert bias.shape == (N,)
    k_pad = _round_up(K, 128)
    n_pad = _round_up(N, 128)
    w = weight.astype(compute_dtype)
    if (k_pad, n_pad) != (K, N):
        w = jnp.pad(w, ((0, k_pad - K), (0, n_pad - N)))
    b = bias.astype(jnp.float32)
    if n_pad != N:
        b = jnp.pad(b, (0, n_pad - N))
    return w, b.reshape(1, n_pad), N


def sparse_input_linear(x, w_prepared, b_prepared, out_dim, *, out_dtype=None):
    """SparseInputLinear.forward: y = x @ W + b, with W/b from prepare_params."""
    M, K = x.shape
    k_pad, n_pad = w_prepared.shape
    assert K <= k_pad and b_prepared.shape == (1, n_pad) and out_dim <= n_pad

    compute_dtype = w_prepared.dtype
    if out_dtype is None:
        out_dtype = x.dtype

    in_itemsize = jnp.dtype(compute_dtype).itemsize
    out_itemsize = jnp.dtype(out_dtype).itemsize
    tm, tn, tk, m_pad = _pick_tiles(M, k_pad, n_pad, in_itemsize, out_itemsize)

    # Cast x to the compute dtype BEFORE padding; only pad when needed
    # (zero rows/cols do not change the matmul reduction).
    x_p = x if x.dtype == compute_dtype else x.astype(compute_dtype)
    if (m_pad, k_pad) != (M, K):
        x_p = jnp.pad(x_p, ((0, m_pad - M), (0, k_pad - K)))

    cfg = _cfg()
    cp_kwargs = {}
    if cfg["vmem"] is not None:
        cp_kwargs["vmem_limit_bytes"] = cfg["vmem"]

    m_tiles, n_tiles, k_tiles = m_pad // tm, n_pad // tn, k_pad // tk

    if k_tiles == 1:
        out = pl.pallas_call(
            _mm_bias_kernel_single_k,
            out_shape=jax.ShapeDtypeStruct((m_pad, n_pad), out_dtype),
            grid_spec=pltpu.PrefetchScalarGridSpec(
                num_scalar_prefetch=0,
                grid=(m_tiles, n_tiles),
                in_specs=[
                    pl.BlockSpec((tm, tk), lambda i, j: (i, 0)),   # x tile
                    pl.BlockSpec((tk, tn), lambda i, j: (0, j)),   # weight tile
                    pl.BlockSpec((1, tn), lambda i, j: (0, j)),    # f32 bias tile
                ],
                out_specs=pl.BlockSpec((tm, tn), lambda i, j: (i, j)),
            ),
            compiler_params=pltpu.CompilerParams(
                dimension_semantics=("parallel", "parallel"), **cp_kwargs),
        )(x_p, w_prepared, b_prepared)
    else:
        out = pl.pallas_call(
            _mm_bias_kernel,
            out_shape=jax.ShapeDtypeStruct((m_pad, n_pad), out_dtype),
            grid_spec=pltpu.PrefetchScalarGridSpec(
                num_scalar_prefetch=0,
                grid=(m_tiles, n_tiles, k_tiles),
                in_specs=[
                    pl.BlockSpec((tm, tk), lambda i, j, k: (i, k)),  # x tile
                    pl.BlockSpec((tk, tn), lambda i, j, k: (k, j)),  # weight tile
                    pl.BlockSpec((1, tn), lambda i, j, k: (0, j)),   # f32 bias tile
                ],
                out_specs=pl.BlockSpec((tm, tn), lambda i, j, k: (i, j)),
                scratch_shapes=[pltpu.VMEM((tm, tn), jnp.float32)],
            ),
            compiler_params=pltpu.CompilerParams(
                dimension_semantics=("parallel", "parallel", "arbitrary"),
                **cp_kwargs),
        )(x_p, w_prepared, b_prepared)

    if (m_pad, n_pad) != (M, out_dim):
        out = out[:M, :out_dim]
    return out


def sparse_input_linear_raw(x, weight, bias, *, compute_dtype=jnp.bfloat16):
    """Convenience path for unprepared f32 params (prefer preparing once)."""
    w_p, b_p, n = prepare_params(weight, bias, compute_dtype=compute_dtype)
    return sparse_input_linear(x, w_p, b_p, n)


def init_params(key, inp_dim, out_dim):
    """SparseInputLinear.reset_parameters(): weight, bias ~ U(-stdv, stdv),
    stdv = 1/sqrt(out_dim)."""
    stdv = 1.0 / math.sqrt(out_dim)
    kw, kb = jax.random.split(key)
    weight = jax.random.uniform(
        kw, (inp_dim, out_dim), dtype=jnp.float32, minval=-stdv, maxval=stdv
    )
    bias = jax.random.uniform(
        kb, (out_dim,), dtype=jnp.float32, minval=-stdv, maxval=stdv
    )
    return weight, bias


if __name__ == "__main__":
    key = jax.random.PRNGKey(0)
    kx1, kx2, kp = jax.random.split(key, 3)

    # Case 1: aligned shapes -> single-K-step kernel, params prepared once.
    M, inp_dim, out_dim = 16, 256, 128
    x = jax.random.normal(kx1, (M, inp_dim), dtype=jnp.float32)
    weight, bias = init_params(kp, inp_dim, out_dim)

    w_p, b_p, n_orig = prepare_params(weight, bias)   # one-time, out of hot path
    out = jax.block_until_ready(sparse_input_linear(x, w_p, b_p, n_orig))
    assert out.shape == (M, out_dim) and out.dtype == jnp.float32

    ref_bf16 = jnp.dot(
        x.astype(jnp.bfloat16), weight.astype(jnp.bfloat16),
        preferred_element_type=jnp.float32,
    ) + bias
    assert jnp.allclose(out, ref_bf16, atol=1e-3, rtol=1e-3)
    ref_f32 = x @ weight + bias
    assert jnp.allclose(out, ref_f32, atol=5e-2, rtol=5e-2)

    # Case 2: non-aligned shapes -> exercises padding and (on v6e/v7x) the
    # multi-K-step accumulator kernel.
    M2, inp_dim2, out_dim2 = 10, 300, 200
    x2 = jax.random.normal(kx2, (M2, inp_dim2), dtype=jnp.float32)
    weight2, bias2 = init_params(jax.random.PRNGKey(1), inp_dim2, out_dim2)
    out2 = jax.block_until_ready(sparse_input_linear_raw(x2, weight2, bias2))
    assert out2.shape == (M2, out_dim2)
    ref2 = x2 @ weight2 + bias2
    assert jnp.allclose(out2, ref2, atol=5e-2, rtol=5e-2)

    print("KERNEL_OK")
</pallas_src>

<mosaic_0001>
module attributes {stable_mosaic.version = 11 : i64} {
  func.func @_mm_bias_kernel_single_k(%arg0: i32, %arg1: i32, %arg2: memref<16x256xbf16, #tpu.memory_space<vmem>>, %arg3: memref<256x128xbf16, #tpu.memory_space<vmem>>, %arg4: memref<1x128xf32, #tpu.memory_space<vmem>>, %arg5: memref<16x128xf32, #tpu.memory_space<vmem>>) attributes {dimension_semantics = [#tpu.dimension_semantics<parallel>, #tpu.dimension_semantics<parallel>], iteration_bounds = array<i64: 1, 1>, scalar_prefetch = 0 : i64, scratch_operands = 0 : i64, tpu.core_type = #tpu.core_type<tc>, window_params = [{transform_indices = @transform_0, window_bounds = array<i64: 16, 256>}, {transform_indices = @transform_1, window_bounds = array<i64: 256, 128>}, {transform_indices = @transform_2, window_bounds = array<i64: 1, 128>}, {transform_indices = @transform_3, window_bounds = array<i64: 16, 128>}]} {
    %c0 = arith.constant 0 : index
    %c0_0 = arith.constant 0 : index
    %0 = vector.load %arg2[%c0, %c0_0] : memref<16x256xbf16, #tpu.memory_space<vmem>>, vector<16x256xbf16>
    %c0_1 = arith.constant 0 : index
    %c0_2 = arith.constant 0 : index
    %1 = vector.load %arg3[%c0_1, %c0_2] : memref<256x128xbf16, #tpu.memory_space<vmem>>, vector<256x128xbf16>
    %cst = arith.constant dense<0.000000e+00> : vector<16x128xf32>
    %2 = tpu.matmul %0, %1, %cst {dimension_numbers = #tpu.dot_dimension_numbers<[1], [0], [0], [1], [0, 0, 1, 1], [], []>} : vector<16x256xbf16>, vector<256x128xbf16>, vector<16x128xf32> -> vector<16x128xf32>
    %c0_3 = arith.constant 0 : index
    %c0_4 = arith.constant 0 : index
    %3 = vector.load %arg4[%c0_3, %c0_4] : memref<1x128xf32, #tpu.memory_space<vmem>>, vector<1x128xf32>
    %4 = vector.broadcast %3 : vector<1x128xf32> to vector<16x128xf32>
    %5 = arith.addf %2, %4 : vector<16x128xf32>
    %c0_5 = arith.constant 0 : index
    %c0_6 = arith.constant 0 : index
    %6 = vector.load %arg5[%c0_5, %c0_6] : memref<16x128xf32, #tpu.memory_space<vmem>>, vector<16x128xf32>
    tpu.vector_store %arg5[%c0_5, %c0_6], %5 {strides = array<i32>} : memref<16x128xf32, #tpu.memory_space<vmem>>, vector<16x128xf32>,
    return
  }
  func.func @transform_0(%arg0: i32, %arg1: i32) -> (i32, i32) {
    %c0_i32 = arith.constant 0 : i32
    %c0_i32_0 = arith.constant 0 : i32
    return %arg0, %c0_i32 : i32, i32
  }
  func.func @transform_1(%arg0: i32, %arg1: i32) -> (i32, i32) {
    %c0_i32 = arith.constant 0 : i32
    %c0_i32_0 = arith.constant 0 : i32
    return %c0_i32, %arg1 : i32, i32
  }
  func.func @transform_2(%arg0: i32, %arg1: i32) -> (i32, i32) {
    %c0_i32 = arith.constant 0 : i32
    %c0_i32_0 = arith.constant 0 : i32
    return %c0_i32, %arg1 : i32, i32
  }
  func.func @transform_3(%arg0: i32, %arg1: i32) -> (i32, i32) {
    %c0_i32 = arith.constant 0 : i32
    return %arg0, %arg1 : i32, i32
  }
}

</mosaic_0001>

<bundles_post_ra>
// kernel: tpu_custom_call.1
= control target key start
LH: loop header
LB: loop body
LE: loop exit
PB: predicated region body
PF: predicated region fallthrough
CT: control target
= control target key end

     0   :  { %8 = vsyncpa [#allocation3], 0  ;;  %s462_s0 = inlined_call_operand.hbm [shape: bf16[16,256], index: 0, kind: input, shape index: {}]   ;;  %s463_s1 = inlined_call_operand.hbm [shape: bf16[256,128], index: 1, kind: input, shape index: {}]   ;;  %s464_s2 = inlined_call_operand.vmem [shape: f32[1,128], index: 2, kind: input, shape index: {}]   ;;  %s465_s3 = inlined_call_operand.hbm [shape: f32[16,128], index: 3, kind: output, shape index: {}]  }
   0x1   :  { %9 = vsyncpa [#allocation6], 0 }
   0x2   :  { %10 = vsyncpa [#allocation4], 0  ;;  %s15_s14 = sshll.u32 %s462_s0, 4  ;;  %s417_s15 = smov [#allocation2]   ;;  %s16_s14 = int_to_ptr.hbm [resolvable:$true] %s15_s14 }
   0x3   :  { %s17_s16 = sshll.u32 %s417_s15, 4  ;;  %s28_s19 = sshll.u32 %s463_s1, 4  ;;  %s18_s16 = int_to_ptr.vmem [resolvable:$true] %s17_s16  ;;  %s29_s19 = int_to_ptr.hbm [resolvable:$true] %s28_s19 }
   0x4   :  { %s418_s20 = smov 128   ;;  %s419_s21 = smov 8  }
   0x5   :  { %23 = dma.hbm_to_vmem [thread:$0]  %s16_s14, 256, %s18_s16, [#allocation3], %s418_s20, %s418_s20, %s419_s21  }
   0x6   :  { %s420_s22 = smov [#allocation5]   ;;  %s421_s24 = smov 64  }
   0x7   :  { %s30_s23 = sshll.u32 %s420_s22, 4  ;;  %s422_s0 = smov 4   ;;  %s31_s23 = int_to_ptr.vmem [resolvable:$true] %s30_s23 }
   0x8   :  { %36 = dma.hbm_to_vmem [thread:$0]  %s29_s19, 2048, %s31_s23, [#allocation6], %s421_s24, %s421_s24, %s422_s0  }
   0x9   :  { %411 = dma.done.wait [#allocation3], 256  }
   0xa   :  { %412 = vsyncadd [#allocation3], 4294967040 }
   0xb   :  { %413 = dma.done.wait [#allocation6], 2048  }
   0xc   :  { %414 = vsyncadd [#allocation6], 4294965248  ;;  %v322_v0 = vld [vmem:[#allocation5 + $0x38] sm:$0xff]  ;;  %v321_v2 = vld [vmem:[#allocation5 + $0x30] sm:$0xff]  ;;  %s423_s26 = smov [#allocation7]   ;;  %s227_s30 = sshll.u32 %s465_s3, 4  ;;  %s228_s30 = int_to_ptr.hbm [resolvable:$true] %s227_s30 }
   0xd   :  { %v330_v1 = vld [vmem:[#allocation5 + $0x78] sm:$0xff]  ;;  %191 = vmatpush.bf16.msra.mxu0 %v322_v0  ;;  %v329_v3 = vld [vmem:[#allocation5 + $0x70] sm:$0xff]  ;;  %v320_v4 = vld [vmem:[#allocation5 + $0x28] sm:$0xff]  ;;  %s225_s27 = sshll.u32 %s423_s26, 4  ;;  %s226_s27 = int_to_ptr.vmem [resolvable:$true] %s225_s27 }
   0xe   :  { %205 = vmatpush.bf16.msra.mxu1 %v330_v1  ;;  %v328_v5 = vld [vmem:[#allocation5 + $0x68] sm:$0xff]  ;;  %v319_v6 = vld [vmem:[#allocation5 + $0x20] sm:$0xff]  ;;  %v318_v8 = vld [vmem:[#allocation5 + $0x18] sm:$0xff] }
   0xf   :  { %v327_v7 = vld [vmem:[#allocation5 + $0x60] sm:$0xff]  ;;  %v326_v9 = vld [vmem:[#allocation5 + $0x58] sm:$0xff]  ;;  %v317_v10 = vld [vmem:[#allocation5 + $0x10] sm:$0xff] }
  0x10   :  { %v325_v11 = vld [vmem:[#allocation5 + $0x50] sm:$0xff]  ;;  %v316_v12 = vld [vmem:[#allocation5 + $0x8] sm:$0xff]  ;;  %v315_v14 = vld [vmem:[#allocation5] sm:$0xff] }
  0x11   :  { %192 = vmatpush.bf16.msra.mxu0 %v321_v2  ;;  %v324_v13 = vld [vmem:[#allocation5 + $0x48] sm:$0xff]  ;;  %v323_v15 = vld [vmem:[#allocation5 + $0x40] sm:$0xff]  ;;  %v243_v16 = vld [vmem:[#allocation2] sm:$0xf] }
  0x12   :  { %206 = vmatpush.bf16.msra.mxu1 %v329_v3  ;;  %v314_v17 = vld [vmem:[#allocation2 + $0x4] sm:$0xf0]  ;;  %v313_v18 = vld [vmem:[#allocation2 + $0x4] sm:$0xf]  ;;  %v245_v19 = vld [vmem:[#allocation2 + $0x8] sm:$0xf0] }
  0x13   :  { %v244_v20 = vor.u32 %v314_v17, %v243_v16  ;;  %v248_v21 = vor.u32 %v313_v18, %v245_v19  ;;  %v338_v22 = vld [vmem:[%s464_s2] ss:$0 sm:$0xff] }
  0x15   :  { %193 = vmatpush.bf16.msra.mxu0 %v320_v4 }
  0x16   :  { %207 = vmatpush.bf16.msra.mxu1 %v328_v5 }
  0x19   :  { %194 = vmatpush.bf16.msra.mxu0 %v319_v6 }
  0x1a   :  { %208 = vmatpush.bf16.msra.mxu1 %v327_v7 }
  0x1d   :  { %195 = vmatpush.bf16.msra.mxu0 %v318_v8 }
  0x1e   :  { %209 = vmatpush.bf16.msra.mxu1 %v326_v9 }
  0x21   :  { %196 = vmatpush.bf16.msra.mxu0 %v317_v10 }
  0x22   :  { %210 = vmatpush.bf16.msra.mxu1 %v325_v11 }
  0x25   :  { %197 = vmatpush.bf16.msra.mxu0 %v316_v12 }
  0x26   :  { %211 = vmatpush.bf16.msra.mxu1 %v324_v13 }
  0x29   :  { %198 = vmatpush.bf16.msra.mxu0 %v315_v14 }
  0x2a   :  { %212 = vmatpush.bf16.msra.mxu1 %v323_v15 }
  0x2c   :  { %199 = vmatmul.bf16.vlgmr.msra.gmra.mxu0 %v244_v20 }
  0x2d   :  { %213 = vmatmul.bf16.vlgmr.msra.gmra.mxu1 %v248_v21 }
  0xa9   :  { %v200_v23 = vpop.f32.mrf.mxu0 }
  0xaa   :  { %v214_v24 = vpop.f32.mrf.mxu1  ;;  %v201_v25 = vadd.f32 %v338_v22, %v200_v23 }
  0xac   :  { %v215_v26 = vadd.f32 %v214_v24, %v201_v25 }
  0xae   :  { %219 = vst [vmem:[#allocation7] sm:$0xff] %v215_v26 }
  0xb1   :  { %v202_v27 = vpop.f32.mrf.mxu0 }
  0xb2   :  { %v203_v28 = vadd.f32 %v338_v22, %v202_v27  ;;  %v216_v29 = vpop.f32.mrf.mxu1 }
  0xb4   :  { %v217_v30 = vadd.f32 %v216_v29, %v203_v28 }
  0xb6   :  { %220 = vst [vmem:[#allocation7 + $0x8] sm:$0xff] %v217_v30 }
  0xb7   :  { %233 = dma.vmem_to_hbm [thread:$0]  %s226_s27, 256, %s228_s30, [#allocation4], %s418_s20, %s418_s20, %s419_s21  }
  0xb8   :  { %415 = dma.done.wait [#allocation4], 256  }
  0xb9   :  { %416 = vsyncadd [#allocation4], 4294967040 }
  0xba   :  { %238 = vsyncpa [#allocation3], 1 }
  0xbb   :  { %239 = vsyncpa [#allocation6], 1 }
  0xbc   :  { %240 = vsyncpa [#allocation4], 1 }

</bundles_post_ra>
